<compile_context>
chip_gen: v6e
topology: v6e:2x2x1
jax: 0.10.0
libtpu: 0.0.40
codegen_flags: <defaults>
</compile_context>

<pallas_src>
import jax
import jax.numpy as jnp
from jax.experimental import pallas as pl
from jax.experimental.pallas import tpu as pltpu


# ----------------------------- problem sizes --------------------------------
NUM_QUBITS = 4
NUM_SHOTS = 8
NUM_LAYERS = 1
HIDDEN_LAYERS = 1

INPUT_DIM = NUM_LAYERS * NUM_QUBITS * 3          # 12
HIDDEN_DIM = NUM_SHOTS * NUM_QUBITS              # 32
OUTPUT_DIM = NUM_SHOTS * NUM_QUBITS * 6          # 192
BATCH = 2

GROUP = 6          # softmax group size (the PyTorch reshape(..., 6))
GROUP_PAD = 8      # padded group width: power of two, lane aligned
NEG_BIG = -1e9     # pad-column bias: exp(NEG_BIG - group_max) == 0 exactly
MAX_TILE_B = 512   # large-batch row tile (amortizes ~0.35us per-grid-step cost)


def _round_up(v, m):
    return (v + m - 1) // m * m


# ------------------------------- kernel --------------------------------------
def _mlp_group_softmax_kernel(x_ref, w1_ref, w2_ref, w3_ref, b_ref, gmask_ref,
                              o_ref):
    f32 = jnp.float32
    hidden = w1_ref.shape[1]
    out_pad = w3_ref.shape[1]

    b1 = b_ref[0:1, 0:hidden]
    b2 = b_ref[1:2, 0:hidden]
    b3 = b_ref[2:3, :]

    # MLP: three f32 MXU matmuls (tiny fraction of the kernel) + ReLU.
    h = jnp.dot(x_ref[...], w1_ref[...], preferred_element_type=f32)
    h = jnp.maximum(h + b1, 0.0)
    h = jnp.dot(h, w2_ref[...], preferred_element_type=f32)
    h = jnp.maximum(h + b2, 0.0)
    # Output layer in the column-permuted, 8-lane-padded layout: (tile_b, 256).
    # Pad lanes have zero weights and bias NEG_BIG.
    logits = jnp.dot(h, w3_ref[...], preferred_element_type=f32) + b3

    # Exact per-group max over aligned groups of GROUP_PAD = 8 lanes via an
    # XOR butterfly.  jnp.roll(v, +d, axis=1)[..., i] == v[..., i - d], so the
    # partner lane i ^ d is carried by roll(+d) where bit d of i is set and by
    # roll(-d) otherwise; the masks are analytic lane-bit tests (no iota
    # rolls), and a partner never crosses its aligned 8-lane group.
    lane = jax.lax.broadcasted_iota(jnp.int32, (1, out_pad), 1)
    gmax = logits
    d = 1
    while d < GROUP_PAD:
        partner = jnp.where((lane & d) != 0,
                            jnp.roll(gmax, d, axis=1),
                            jnp.roll(gmax, -d, axis=1))
        gmax = jnp.maximum(gmax, partner)
        d *= 2

    e = jnp.exp(logits - gmax)          # pad lanes -> exactly 0

    # Per-group sum on the (otherwise idle) MXU: block-diagonal ones mask,
    # broadcasting each group's sum back to all 8 of its lanes.
    gsum = jnp.dot(e, gmask_ref[...], preferred_element_type=f32)

    o_ref[...] = e / gsum               # gsum >= 1 (the max lane contributes 1)


# --------------------------- one-time parameter prep -------------------------
def prepare_params(w1, b1, w2, b2, w3, b3):
    """One-time repacking, hoisted out of the per-call forward path.

    * w3 columns are permuted so softmax group g occupies lanes [8g, 8g+6) of
      a lane-dense 256-wide output; pad lanes get zero weight / NEG_BIG bias.
    * The three biases are packed into a single (8, 256) buffer (one DMA).
    * The 256x256 block-diagonal group-sum mask (i//8 == j//8) is prebuilt.
    """
    f32 = jnp.float32
    hidden = w1.shape[1]
    output_dim = w3.shape[1]
    groups = output_dim // GROUP
    out_pad = groups * GROUP_PAD

    cols = jnp.arange(output_dim)
    perm = GROUP_PAD * (cols // GROUP) + (cols % GROUP)
    w3p = jnp.zeros((hidden, out_pad), f32).at[:, perm].set(w3.astype(f32))
    b3p = jnp.full((out_pad,), NEG_BIG, f32).at[perm].set(
        b3.reshape(-1).astype(f32))

    biases = jnp.zeros((8, out_pad), f32)
    biases = biases.at[0, :hidden].set(b1.reshape(-1).astype(f32))
    biases = biases.at[1, :hidden].set(b2.reshape(-1).astype(f32))
    biases = biases.at[2, :].set(b3p)

    idx = jnp.arange(out_pad)
    gmask = (idx[:, None] // GROUP_PAD == idx[None, :] // GROUP_PAD).astype(f32)

    return (w1.astype(f32), w2.astype(f32), w3p, biases, gmask)


# ------------------------------- forward -------------------------------------
@jax.jit
def classical_shadow_forward(x, params):
    """x: (B, input_dim) f32; params: output of prepare_params().
    Returns (B, output_dim // 6, 6) softmax probabilities (f32)."""
    w1, w2, w3p, biases, gmask = params
    batch, input_dim = x.shape
    hidden = w1.shape[1]
    out_pad = w3p.shape[1]
    groups = out_pad // GROUP_PAD

    # Row tiling: a single tile for small batches, <=512-row tiles otherwise.
    n_tiles = -(-batch // MAX_TILE_B)
    tile_b = _round_up(-(-batch // n_tiles), 8)
    b_pad = tile_b * n_tiles

    xp = x.astype(jnp.float32)
    if b_pad != batch:
        xp = jnp.pad(xp, ((0, b_pad - batch), (0, 0)))

    y_pad = pl.pallas_call(
        _mlp_group_softmax_kernel,
        out_shape=jax.ShapeDtypeStruct((b_pad, out_pad), jnp.float32),
        grid=(n_tiles,),
        in_specs=[
            pl.BlockSpec((tile_b, input_dim), lambda i: (i, 0)),  # x: batch-tiled
            pl.BlockSpec((input_dim, hidden), lambda i: (0, 0)),  # weights stay
            pl.BlockSpec((hidden, hidden), lambda i: (0, 0)),     #  VMEM-resident
            pl.BlockSpec((hidden, out_pad), lambda i: (0, 0)),
            pl.BlockSpec((8, out_pad), lambda i: (0, 0)),         # packed biases
            pl.BlockSpec((out_pad, out_pad), lambda i: (0, 0)),   # group-sum mask
        ],
        out_specs=pl.BlockSpec((tile_b, out_pad), lambda i: (i, 0)),
        compiler_params=pltpu.CompilerParams(
            # Batch tiles are independent.  On v7x, switch to
            # pltpu.CORE_PARALLEL if "parallel" alone does not shard this axis
            # across the two TensorCores (kernel has no cross-step state).
            dimension_semantics=("parallel",)),
    )(xp, w1, w2, w3p, biases, gmask)

    # Glue: drop batch/lane padding, reshape to (B, output_dim // 6, 6).
    return y_pad[:batch].reshape(batch, groups, GROUP_PAD)[:, :, :GROUP]


# ----------------------- deterministic parameter init ------------------------
def init_linear(key, fan_in, fan_out):
    """PyTorch-style uniform(-1/sqrt(fan_in), 1/sqrt(fan_in)); W stored (in, out)."""
    kw, kb = jax.random.split(key)
    bound = 1.0 / jnp.sqrt(fan_in)
    w = jax.random.uniform(kw, (fan_in, fan_out), jnp.float32, -bound, bound)
    b = jax.random.uniform(kb, (1, fan_out), jnp.float32, -bound, bound)
    return w, b


# ------------------------------- reference -----------------------------------
def reference_forward(x, w1, b1, w2, b2, w3, b3):
    mm = lambda a, b: jnp.dot(a, b, precision=jax.lax.Precision.HIGHEST)
    h = jnp.maximum(mm(x, w1) + b1, 0.0)
    h = jnp.maximum(mm(h, w2) + b2, 0.0)
    logits = mm(h, w3) + b3
    return jax.nn.softmax(logits.reshape(x.shape[0], -1, GROUP), axis=-1)


if __name__ == "__main__":
    root = jax.random.PRNGKey(0)
    kx, k1, k2, k3, kb = jax.random.split(root, 5)

    x = jax.random.normal(kx, (BATCH, INPUT_DIM), jnp.float32)
    w1, b1 = init_linear(k1, INPUT_DIM, HIDDEN_DIM)
    w2, b2 = init_linear(k2, HIDDEN_DIM, HIDDEN_DIM)
    w3, b3 = init_linear(k3, HIDDEN_DIM, OUTPUT_DIM)

    # One-time prep (permutation / padding / packing), hoisted out of forward.
    params = prepare_params(w1, b1, w2, b2, w3, b3)

    # Small-batch run (B = 2: one grid step, rows padded to 8).
    y = jax.block_until_ready(classical_shadow_forward(x, params))
    assert y.shape == (BATCH, OUTPUT_DIM // 6, 6), y.shape

    y_ref = reference_forward(x, w1, b1, w2, b2, w3, b3)
    assert jnp.allclose(y, y_ref, atol=5e-3, rtol=5e-3), "mismatch vs f32 reference"
    assert jnp.allclose(jnp.sum(y, axis=-1), 1.0, atol=3e-3), "group rows must sum to 1"

    # Larger batch: exercises the batch tiling / row-padding path.
    xb = jax.random.normal(kb, (300, INPUT_DIM), jnp.float32)
    yb = jax.block_until_ready(classical_shadow_forward(xb, params))
    yb_ref = reference_forward(xb, w1, b1, w2, b2, w3, b3)
    assert yb.shape == (300, OUTPUT_DIM // 6, 6), yb.shape
    assert jnp.allclose(yb, yb_ref, atol=5e-3, rtol=5e-3), "mismatch on batched run"

    print("KERNEL_OK")
</pallas_src>

<mosaic_0001>
module attributes {stable_mosaic.version = 11 : i64} {
  func.func @_mlp_group_softmax_kernel(%arg0: i32, %arg1: memref<8x12xf32, #tpu.memory_space<vmem>>, %arg2: memref<12x32xf32, #tpu.memory_space<vmem>>, %arg3: memref<32x32xf32, #tpu.memory_space<vmem>>, %arg4: memref<32x256xf32, #tpu.memory_space<vmem>>, %arg5: memref<8x256xf32, #tpu.memory_space<vmem>>, %arg6: memref<256x256xf32, #tpu.memory_space<vmem>>, %arg7: memref<8x256xf32, #tpu.memory_space<vmem>>) attributes {dimension_semantics = [#tpu.dimension_semantics<parallel>], iteration_bounds = array<i64: 1>, scalar_prefetch = 0 : i64, scratch_operands = 0 : i64, tpu.core_type = #tpu.core_type<tc>, window_params = [{transform_indices = @transform_0, window_bounds = array<i64: 8, 12>}, {pipeline_mode = #tpu.pipeline_mode<synchronous>, transform_indices = @transform_1, window_bounds = array<i64: 12, 32>}, {pipeline_mode = #tpu.pipeline_mode<synchronous>, transform_indices = @transform_2, window_bounds = array<i64: 32, 32>}, {pipeline_mode = #tpu.pipeline_mode<synchronous>, transform_indices = @transform_3, window_bounds = array<i64: 32, 256>}, {pipeline_mode = #tpu.pipeline_mode<synchronous>, transform_indices = @transform_4, window_bounds = array<i64: 8, 256>}, {pipeline_mode = #tpu.pipeline_mode<synchronous>, transform_indices = @transform_5, window_bounds = array<i64: 256, 256>}, {transform_indices = @transform_6, window_bounds = array<i64: 8, 256>}]} {
    %c0 = arith.constant 0 : index
    %c0_0 = arith.constant 0 : index
    %0 = vector.load %arg5[%c0, %c0_0] : memref<8x256xf32, #tpu.memory_space<vmem>>, vector<1x32xf32>
    %c1 = arith.constant 1 : index
    %c0_1 = arith.constant 0 : index
    %1 = vector.load %arg5[%c1, %c0_1] : memref<8x256xf32, #tpu.memory_space<vmem>>, vector<1x32xf32>
    %c2 = arith.constant 2 : index
    %c0_2 = arith.constant 0 : index
    %2 = vector.load %arg5[%c2, %c0_2] : memref<8x256xf32, #tpu.memory_space<vmem>>, vector<1x256xf32>
    %c0_3 = arith.constant 0 : index
    %c0_4 = arith.constant 0 : index
    %3 = vector.load %arg1[%c0_3, %c0_4] : memref<8x12xf32, #tpu.memory_space<vmem>>, vector<8x12xf32>
    %c0_5 = arith.constant 0 : index
    %c0_6 = arith.constant 0 : index
    %4 = vector.load %arg2[%c0_5, %c0_6] : memref<12x32xf32, #tpu.memory_space<vmem>>, vector<12x32xf32>
    %cst = arith.constant dense<0.000000e+00> : vector<8x32xf32>
    %5 = tpu.matmul %3, %4, %cst {dimension_numbers = #tpu.dot_dimension_numbers<[1], [0], [0], [1], [0, 0, 1, 1], [], []>} : vector<8x12xf32>, vector<12x32xf32>, vector<8x32xf32> -> vector<8x32xf32>
    %6 = vector.broadcast %0 : vector<1x32xf32> to vector<8x32xf32>
    %7 = arith.addf %5, %6 : vector<8x32xf32>
    %cst_7 = arith.constant 0.000000e+00 : f32
    %8 = vector.broadcast %cst_7 : f32 to vector<8x32xf32>
    %9 = arith.maximumf %7, %8 : vector<8x32xf32>
    %c0_8 = arith.constant 0 : index
    %c0_9 = arith.constant 0 : index
    %10 = vector.load %arg3[%c0_8, %c0_9] : memref<32x32xf32, #tpu.memory_space<vmem>>, vector<32x32xf32>
    %cst_10 = arith.constant dense<0.000000e+00> : vector<8x32xf32>
    %11 = tpu.matmul %9, %10, %cst_10 {dimension_numbers = #tpu.dot_dimension_numbers<[1], [0], [0], [1], [0, 0, 1, 1], [], []>} : vector<8x32xf32>, vector<32x32xf32>, vector<8x32xf32> -> vector<8x32xf32>
    %12 = vector.broadcast %1 : vector<1x32xf32> to vector<8x32xf32>
    %13 = arith.addf %11, %12 : vector<8x32xf32>
    %cst_11 = arith.constant 0.000000e+00 : f32
    %14 = vector.broadcast %cst_11 : f32 to vector<8x32xf32>
    %15 = arith.maximumf %13, %14 : vector<8x32xf32>
    %c0_12 = arith.constant 0 : index
    %c0_13 = arith.constant 0 : index
    %16 = vector.load %arg4[%c0_12, %c0_13] : memref<32x256xf32, #tpu.memory_space<vmem>>, vector<32x256xf32>
    %cst_14 = arith.constant dense<0.000000e+00> : vector<8x256xf32>
    %17 = tpu.matmul %15, %16, %cst_14 {dimension_numbers = #tpu.dot_dimension_numbers<[1], [0], [0], [1], [0, 0, 1, 1], [], []>} : vector<8x32xf32>, vector<32x256xf32>, vector<8x256xf32> -> vector<8x256xf32>
    %18 = vector.broadcast %2 : vector<1x256xf32> to vector<8x256xf32>
    %19 = arith.addf %17, %18 : vector<8x256xf32>
    %20 = tpu.iota {dimensions = array<i32: 1>} : vector<1x256xi32>
    %c1_i32 = arith.constant 1 : i32
    %21 = vector.broadcast %c1_i32 : i32 to vector<1x256xi32>
    %22 = arith.andi %20, %21 : vector<1x256xi32>
    %c0_i32 = arith.constant 0 : i32
    %23 = vector.broadcast %c0_i32 : i32 to vector<1x256xi32>
    %24 = arith.cmpi ne, %22, %23 : vector<1x256xi32>
    %25 = vector.extract_strided_slice %19 {offsets = [0, 255], sizes = [8, 1], strides = [1, 1]} : vector<8x256xf32> to vector<8x1xf32>
    %26 = vector.extract_strided_slice %19 {offsets = [0, 0], sizes = [8, 255], strides = [1, 1]} : vector<8x256xf32> to vector<8x255xf32>
    %27 = tpu.concatenate %25, %26 in 1 : vector<8x1xf32>, vector<8x255xf32> -> vector<8x256xf32>
    %28 = vector.extract_strided_slice %19 {offsets = [0, 1], sizes = [8, 255], strides = [1, 1]} : vector<8x256xf32> to vector<8x255xf32>
    %29 = vector.extract_strided_slice %19 {offsets = [0, 0], sizes = [8, 1], strides = [1, 1]} : vector<8x256xf32> to vector<8x1xf32>
    %30 = tpu.concatenate %28, %29 in 1 : vector<8x255xf32>, vector<8x1xf32> -> vector<8x256xf32>
    %31 = vector.shape_cast %24 : vector<1x256xi1> to vector<1x256xi1>
    %32 = vector.broadcast %31 : vector<1x256xi1> to vector<8x256xi1>
    %33 = arith.select %32, %27, %30 : vector<8x256xi1>, vector<8x256xf32>
    %34 = arith.maximumf %19, %33 : vector<8x256xf32>
    %c2_i32 = arith.constant 2 : i32
    %35 = vector.broadcast %c2_i32 : i32 to vector<1x256xi32>
    %36 = arith.andi %20, %35 : vector<1x256xi32>
    %c0_i32_15 = arith.constant 0 : i32
    %37 = vector.broadcast %c0_i32_15 : i32 to vector<1x256xi32>
    %38 = arith.cmpi ne, %36, %37 : vector<1x256xi32>
    %39 = vector.extract_strided_slice %34 {offsets = [0, 254], sizes = [8, 2], strides = [1, 1]} : vector<8x256xf32> to vector<8x2xf32>
    %40 = vector.extract_strided_slice %34 {offsets = [0, 0], sizes = [8, 254], strides = [1, 1]} : vector<8x256xf32> to vector<8x254xf32>
    %41 = tpu.concatenate %39, %40 in 1 : vector<8x2xf32>, vector<8x254xf32> -> vector<8x256xf32>
    %42 = vector.extract_strided_slice %34 {offsets = [0, 2], sizes = [8, 254], strides = [1, 1]} : vector<8x256xf32> to vector<8x254xf32>
    %43 = vector.extract_strided_slice %34 {offsets = [0, 0], sizes = [8, 2], strides = [1, 1]} : vector<8x256xf32> to vector<8x2xf32>
    %44 = tpu.concatenate %42, %43 in 1 : vector<8x254xf32>, vector<8x2xf32> -> vector<8x256xf32>
    %45 = vector.shape_cast %38 : vector<1x256xi1> to vector<1x256xi1>
    %46 = vector.broadcast %45 : vector<1x256xi1> to vector<8x256xi1>
    %47 = arith.select %46, %41, %44 : vector<8x256xi1>, vector<8x256xf32>
    %48 = arith.maximumf %34, %47 : vector<8x256xf32>
    %c4_i32 = arith.constant 4 : i32
    %49 = vector.broadcast %c4_i32 : i32 to vector<1x256xi32>
    %50 = arith.andi %20, %49 : vector<1x256xi32>
    %c0_i32_16 = arith.constant 0 : i32
    %51 = vector.broadcast %c0_i32_16 : i32 to vector<1x256xi32>
    %52 = arith.cmpi ne, %50, %51 : vector<1x256xi32>
    %53 = vector.extract_strided_slice %48 {offsets = [0, 252], sizes = [8, 4], strides = [1, 1]} : vector<8x256xf32> to vector<8x4xf32>
    %54 = vector.extract_strided_slice %48 {offsets = [0, 0], sizes = [8, 252], strides = [1, 1]} : vector<8x256xf32> to vector<8x252xf32>
    %55 = tpu.concatenate %53, %54 in 1 : vector<8x4xf32>, vector<8x252xf32> -> vector<8x256xf32>
    %56 = vector.extract_strided_slice %48 {offsets = [0, 4], sizes = [8, 252], strides = [1, 1]} : vector<8x256xf32> to vector<8x252xf32>
    %57 = vector.extract_strided_slice %48 {offsets = [0, 0], sizes = [8, 4], strides = [1, 1]} : vector<8x256xf32> to vector<8x4xf32>
    %58 = tpu.concatenate %56, %57 in 1 : vector<8x252xf32>, vector<8x4xf32> -> vector<8x256xf32>
    %59 = vector.shape_cast %52 : vector<1x256xi1> to vector<1x256xi1>
    %60 = vector.broadcast %59 : vector<1x256xi1> to vector<8x256xi1>
    %61 = arith.select %60, %55, %58 : vector<8x256xi1>, vector<8x256xf32>
    %62 = arith.maximumf %48, %61 : vector<8x256xf32>
    %63 = arith.subf %19, %62 : vector<8x256xf32>
    %64 = math.exp %63 : vector<8x256xf32>
    %c0_17 = arith.constant 0 : index
    %c0_18 = arith.constant 0 : index
    %65 = vector.load %arg6[%c0_17, %c0_18] : memref<256x256xf32, #tpu.memory_space<vmem>>, vector<256x256xf32>
    %cst_19 = arith.constant dense<0.000000e+00> : vector<8x256xf32>
    %66 = tpu.matmul %64, %65, %cst_19 {dimension_numbers = #tpu.dot_dimension_numbers<[1], [0], [0], [1], [0, 0, 1, 1], [], []>} : vector<8x256xf32>, vector<256x256xf32>, vector<8x256xf32> -> vector<8x256xf32>
    %67 = arith.divf %64, %66 : vector<8x256xf32>
    %c0_20 = arith.constant 0 : index
    %c0_21 = arith.constant 0 : index
    %68 = vector.load %arg7[%c0_20, %c0_21] : memref<8x256xf32, #tpu.memory_space<vmem>>, vector<8x256xf32>
    tpu.vector_store %arg7[%c0_20, %c0_21], %67 {strides = array<i32>} : memref<8x256xf32, #tpu.memory_space<vmem>>, vector<8x256xf32>,
    return
  }
  func.func @transform_0(%arg0: i32) -> (i32, i32) {
    %c0_i32 = arith.constant 0 : i32
    %c0_i32_0 = arith.constant 0 : i32
    return %arg0, %c0_i32 : i32, i32
  }
  func.func @transform_1(%arg0: i32) -> (i32, i32) {
    %c0_i32 = arith.constant 0 : i32
    %c0_i32_0 = arith.constant 0 : i32
    %c0_i32_1 = arith.constant 0 : i32
    return %c0_i32, %c0_i32_0 : i32, i32
  }
  func.func @transform_2(%arg0: i32) -> (i32, i32) {
    %c0_i32 = arith.constant 0 : i32
    %c0_i32_0 = arith.constant 0 : i32
    %c0_i32_1 = arith.constant 0 : i32
    return %c0_i32, %c0_i32_0 : i32, i32
  }
  func.func @transform_3(%arg0: i32) -> (i32, i32) {
    %c0_i32 = arith.constant 0 : i32
    %c0_i32_0 = arith.constant 0 : i32
    %c0_i32_1 = arith.constant 0 : i32
    return %c0_i32, %c0_i32_0 : i32, i32
  }
  func.func @transform_4(%arg0: i32) -> (i32, i32) {
    %c0_i32 = arith.constant 0 : i32
    %c0_i32_0 = arith.constant 0 : i32
    %c0_i32_1 = arith.constant 0 : i32
    return %c0_i32, %c0_i32_0 : i32, i32
  }
  func.func @transform_5(%arg0: i32) -> (i32, i32) {
    %c0_i32 = arith.constant 0 : i32
    %c0_i32_0 = arith.constant 0 : i32
    %c0_i32_1 = arith.constant 0 : i32
    return %c0_i32, %c0_i32_0 : i32, i32
  }
  func.func @transform_6(%arg0: i32) -> (i32, i32) {
    %c0_i32 = arith.constant 0 : i32
    %c0_i32_0 = arith.constant 0 : i32
    return %arg0, %c0_i32 : i32, i32
  }
}

</mosaic_0001>

<bundles_post_ra>
// kernel: classical_shadow_forward.1
= control target key start
LH: loop header
LB: loop body
LE: loop exit
PB: predicated region body
PF: predicated region fallthrough
CT: control target
= control target key end

     0   :  { %11 = vsyncpa [#allocation3], 0  ;;  %s864_s0 = inlined_call_operand.vmem [shape: f32[8,12], index: 0, kind: input, shape index: {}]   ;;  %s865_s1 = inlined_call_operand.hbm [shape: f32[12,32], index: 1, kind: input, shape index: {}]   ;;  %s866_s2 = inlined_call_operand.hbm [shape: f32[32,32], index: 2, kind: input, shape index: {}]   ;;  %s867_s3 = inlined_call_operand.hbm [shape: f32[32,256], index: 3, kind: input, shape index: {}]   ;;  %s868_s4 = inlined_call_operand.vmem [shape: f32[8,256], index: 4, kind: input, shape index: {}]   ;;  %s869_s5 = inlined_call_operand.hbm [shape: f32[256,256], index: 5, kind: input, shape index: {}]   ;;  %s870_s6 = inlined_call_operand.vmem [shape: f32[8,256], index: 6, kind: output, shape index: {}]  }
   0x1   :  { %12 = vsyncpa [#allocation5], 0 }
   0x2   :  { %13 = vsyncpa [#allocation8], 0  ;;  %s736_s21 = smov [#allocation4]   ;;  %s737_s23 = smov [#allocation2]  }
   0x3   :  { %s33_s22 = sshll.u32 %s736_s21, 4  ;;  %s21_s24 = sshll.u32 %s737_s23, 4  ;;  %s34_s22 = int_to_ptr.vmem [resolvable:$true] %s33_s22  ;;  %s22_s24 = int_to_ptr.vmem [resolvable:$true] %s21_s24 }
   0x4   :  { %s658_s25 = scalar_lea.vmem %s34_s22, 512  ;;  %p663_p1 = scmp.lt.s32.totalorder %s34_s22, %s34_s22 }
   0x5   :  { %p659_p0 = scmp.ne.s32.totalorder %s34_s22, %s658_s25  ;;  %p664_p2 = scmp.lt.s32.totalorder %s658_s25, %s658_s25 }
   0x7   :  { %p665_p3 = por %p664_p2, %p663_p1 }
   0x9   :  { %p666_p4 = pnand %p665_p3, %p659_p0 }
   0xb   :  { %669 = shalt.err (!%p666_p4)
}
   0xc   :  { %s738_s26 = smov 128   ;;  %s739_s27 = smov 8  }
   0xd   :  { %39 = dma.hbm_to_vmem [thread:$0]  %s866_s2, 512, %s34_s22, [#allocation5], %s738_s26, %s738_s26, %s739_s27  }
   0xe   :  { %s678_s30 = scalar_lea.vmem %s22_s24, 256  ;;  %p683_p6 = scmp.lt.s32.totalorder %s22_s24, %s22_s24 }
   0xf   :  { %p679_p5 = scmp.ne.s32.totalorder %s22_s24, %s678_s30  ;;  %p684_p7 = scmp.lt.s32.totalorder %s678_s30, %s678_s30 }
  0x11   :  { %p685_p8 = por %p684_p7, %p683_p6 }
  0x13   :  { %p686_p9 = pnand %p685_p8, %p679_p5 }
  0x15   :  { %689 = shalt.err (!%p686_p9)
}
  0x16   :  { %27 = dma.hbm_to_vmem [thread:$0]  %s865_s1, 256, %s22_s24, [#allocation3], %s738_s26, %s738_s26, %s739_s27  }
  0x17   :  { %s740_s9 = smov [#allocation6]  }
  0x18   :  { %s45_s10 = sshll.u32 %s740_s9, 4  ;;  %s46_s10 = int_to_ptr.vmem [resolvable:$true] %s45_s10 }
  0x19   :  { %s698_s11 = scalar_lea.vmem %s46_s10, 1024  ;;  %p703_p11 = scmp.lt.s32.totalorder %s46_s10, %s46_s10 }
  0x1a   :  { %p699_p10 = scmp.ne.s32.totalorder %s46_s10, %s698_s11  ;;  %p704_p12 = scmp.lt.s32.totalorder %s698_s11, %s698_s11 }
  0x1c   :  { %p705_p13 = por %p704_p12, %p703_p11 }
  0x1e   :  { %p706_p0 = pnand %p705_p13, %p699_p10 }
  0x20   :  { %709 = shalt.err (!%p706_p0)
}
  0x21   :  { %s741_s2 = smov 256   ;;  %s742_s12 = smov 16  }
  0x22   :  { %51 = dma.hbm_to_vmem [thread:$0]  %s867_s3, 1024, %s46_s10, [#allocation5], %s741_s2, %s741_s2, %s742_s12  }
  0x23   :  { %s743_s15 = smov [#allocation7]  }
  0x24   :  { %s59_s16 = sshll.u32 %s743_s15, 4  ;;  %s60_s16 = int_to_ptr.vmem [resolvable:$true] %s59_s16 }
  0x25   :  { %s718_s1 = scalar_lea.vmem %s60_s16, 8192  ;;  %p723_p2 = scmp.lt.s32.totalorder %s60_s16, %s60_s16 }
  0x26   :  { %p719_p1 = scmp.ne.s32.totalorder %s60_s16, %s718_s1  ;;  %p724_p3 = scmp.lt.s32.totalorder %s718_s1, %s718_s1 }
  0x28   :  { %p725_p4 = por %p724_p3, %p723_p2 }
  0x2a   :  { %p726_p5 = pnand %p725_p4, %p719_p1 }
  0x2c   :  { %729 = shalt.err (!%p726_p5)
}
  0x2d   :  { %65 = dma.hbm_to_vmem [thread:$0]  %s869_s5, 8192, %s60_s16, [#allocation8], %s741_s2, %s741_s2, %s742_s12  }
  0x2e   :  { %730 = dma.done.wait [#allocation3], 256  }
  0x2f   :  { %731 = vsyncadd [#allocation3], 4294967040 }
  0x30   :  { %732 = dma.done.wait [#allocation5], 1536  }
  0x31   :  { %733 = vsyncadd [#allocation5], 4294965760 }
  0x32   :  { %734 = dma.done.wait [#allocation8], 8192  }
  0x33   :  { %735 = vsyncadd [#allocation8], 4294959104  ;;  %v744_v0 = vmov 0.0   ;;  %vm745_vm0 = vmmov 0   ;;  %vm89_vm1 = vcmask 1043456   ;;  %v83_v2 = vld [vmem:[#allocation2] sm:$0xff]  ;;  %v252_v26 = vlaneseq }
  0x34   :  { %608 = vmatprep.subr.mxu0 %v744_v0  ;;  %612 = vmatprep.mubr.msk.f32.mxu0 %vm745_vm0, %v744_v0  ;;  %v84_v1 = vld [vmem:[#allocation2 + $0x8] sm:$0xf]  ;;  %v82_v3 = vld [vmem:[%s864_s0] sm:$0xff]  ;;  %vm85_vm2 = vcmask 97280   ;;  %v165_v6 = vld [vmem:[#allocation4 + $0x8] sm:$0xff]  ;;  %vm168_vm3 = vcmask 261120  }
  0x35   :  { %609 = vmatpush3.msk.msra.mxu0 %vm89_vm1, %v84_v1  ;;  %v167_v4 = vld [vmem:[#allocation4 + $0x18] sm:$0xff]  ;;  %v166_v5 = vld [vmem:[#allocation4 + $0x10] sm:$0xff]  ;;  %v164_v7 = vld [vmem:[#allocation4] sm:$0xff]  ;;  %v253_v27 = vshrl.u32 %v252_v26, 7  ;;  %s746_s24 = smov 127   ;;  %s747_s25 = smov 1  }
  0x36   :  { %610 = vmatprep.subr.mxu0 %v744_v0  ;;  %v250_v8 = vld [vmem:[#allocation6 + $0x38] sm:$0xff]  ;;  %v78_v9 = vld [vmem:[%s868_s4] ss:$0 sm:$0xff]  ;;  %v248_v15 = vld [vmem:[#allocation6 + $0x28] sm:$0xff]  ;;  %v821_v37 = vand.u32 127, %v252_v26  ;;  %vm359_vm4 = vcmask 1039360  }
  0x37   :  { %611 = vmatpush3.msra.mxu0 %v83_v2  ;;  %v249_v14 = vld [vmem:[#allocation6 + $0x30] sm:$0xff]  ;;  %v247_v16 = vld [vmem:[#allocation6 + $0x20] sm:$0xff]  ;;  %v246_v17 = vld [vmem:[#allocation6 + $0x18] sm:$0xff]  ;;  %v254_v28 = vsub.s32 0, %v253_v27  ;;  %v258_v30 = vsub.s32 1, %v253_v27  ;;  %vm350_vm5 = vcmask 7168  }
  0x38   :  { %613 = vmatmul.mubr.msk.f32.vlgmr.msra.gmra.mxu0 %vm85_vm2, %v82_v3  ;;  %615 = vmatprep.subr.mxu0 %v744_v0  ;;  %v245_v18 = vld [vmem:[#allocation6 + $0x10] sm:$0xff]  ;;  %v244_v19 = vld [vmem:[#allocation6 + $0x8] sm:$0xff]  ;;  %v243_v20 = vld [vmem:[#allocation6] sm:$0xff]  ;;  %v824_v38 = vadd.s32 128, %v821_v37  ;;  %v339_v40 = vand.u32 1, %v821_v37  ;;  %s749_s26 = smov 126  }
  0x39   :  { %616 = vmatpush3.msra.mxu0 %v167_v4  ;;  %623 = vmatprep.mubr.msk.f32.mxu0 %vm745_vm0, %v744_v0  ;;  %v79_v21 = vld [vmem:[%s868_s4 + $0x1] ss:$0 sm:$0xff]  ;;  %v595_v29 = vld [vmem:[%s868_s4 + $0x2] ss:$8 sm:$0x3]  ;;  %s748_s4 = smov 2  }
  0x3a   :  { %617 = vmatprep.subr.mxu0 %v744_v0  ;;  %v255_v31 = vrot.slane %v595_v29, %v254_v28  ;;  %v259_v32 = vrot.slane %v595_v29, %v258_v30  ;;  %v340_v41 = vand.u32 1, %v824_v38  ;;  %vm341_vm6 = vcmp.ne.s32.totalorder %v339_v40, 0  ;;  %v478_v53 = vld [vmem:[#allocation7 + $0xf8] sm:$0xff]  ;;  %v477_v54 = vld [vmem:[#allocation7 + $0xf0] sm:$0xff]  ;;  %v476_v55 = vld [vmem:[#allocation7 + $0xe8] sm:$0xff]  ;;  %s750_s27 = smov 4  }
  0x3b   :  { %618 = vmatpush3.msra.mxu0 %v166_v5  ;;  %511 = vmatprep.subr.mxu1 %v478_v53  ;;  %v475_v56 = vld [vmem:[#allocation7 + $0xe0] sm:$0xff]  ;;  %v474_v57 = vld [vmem:[#allocation7 + $0xd8] sm:$0xff]  ;;  %v473_v58 = vld [vmem:[#allocation7 + $0xd0] sm:$0xff]  ;;  %v373_v30 = vand.u32 2, %v821_v37  ;;  %vm384_vm8 = vcmask 15360   ;;  %vm393_vm9 = vcmask 1031168  }
  0x3c   :  { %619 = vmatprep.subr.mxu0 %v744_v0  ;;  %vm342_vm7 = vcmp.ne.s32.totalorder %v340_v41, 0  ;;  %512 = vmatpush1.msra.mxu1 %v477_v54  ;;  %v472_v59 = vld [vmem:[#allocation7 + $0xc8] sm:$0xff]  ;;  %v471_v60 = vld [vmem:[#allocation7 + $0xc0] sm:$0xff]  ;;  %v470_v61 = vld [vmem:[#allocation7 + $0xb8] sm:$0xff]  ;;  %s751_s28 = smov 124   ;;  %vm418_vm12 = vcmask 31744  }
  0x3d   :  { %620 = vmatpush3.msra.mxu0 %v165_v6  ;;  %513 = vmatprep.subr.mxu1 %v476_v55  ;;  %v469_v62 = vld [vmem:[#allocation7 + $0xb0] sm:$0xff]  ;;  %v468_v63 = vld [vmem:[#allocation7 + $0xa8] sm:$0xff]  ;;  %v466_v1 = vld [vmem:[#allocation7 + $0x98] sm:$0xff]  ;;  %vm840_vm10 = vcmp.ne.s32.totalorder %v373_v30, 0  ;;  %vm427_vm13 = vcmask 1014784  }
  0x3e   :  { %621 = vmatprep.subr.mxu0 %v744_v0  ;;  %514 = vmatpush1.msra.mxu1 %v475_v56  ;;  %v465_v2 = vld [vmem:[#allocation7 + $0x90] sm:$0xff]  ;;  %v464_v3 = vld [vmem:[#allocation7 + $0x88] sm:$0xff]  ;;  %v463_v4 = vld [vmem:[#allocation7 + $0x80] sm:$0xff] }
  0x3f   :  { %622 = vmatpush3.msra.mxu0 %v164_v7  ;;  %515 = vmatprep.subr.mxu1 %v474_v57  ;;  %v462_v5 = vld [vmem:[#allocation7 + $0x78] sm:$0xff]  ;;  %v461_v6 = vld [vmem:[#allocation7 + $0x70] sm:$0xff]  ;;  %v460_v7 = vld [vmem:[#allocation7 + $0x68] sm:$0xff] }
  0x40   :  { %289 = vmatprep.subr.mxu0 %v250_v8  ;;  %516 = vmatpush1.msra.mxu1 %v473_v58  ;;  %v459_v8 = vld [vmem:[#allocation7 + $0x60] sm:$0xff]  ;;  %v505_v26 = vld [vmem:[#allocation7 + $0x1d0] sm:$0xff]  ;;  %v504_v27 = vld [vmem:[#allocation7 + $0x1c8] sm:$0xff] }
  0x41   :  { %517 = vmatprep.subr.mxu1 %v472_v59  ;;  %v503_v28 = vld [vmem:[#allocation7 + $0x1c0] sm:$0xff]  ;;  %v502_v29 = vld [vmem:[#allocation7 + $0x1b8] sm:$0xff]  ;;  %v496_v53 = vld [vmem:[#allocation7 + $0x188] sm:$0xff] }
  0x42   :  { %518 = vmatpush1.msra.mxu1 %v471_v60  ;;  %v499_v40 = vld [vmem:[#allocation7 + $0x1a0] sm:$0xff]  ;;  %v494_v59 = vld [vmem:[#allocation7 + $0x178] sm:$0xff]  ;;  %v493_v60 = vld [vmem:[#allocation7 + $0x170] sm:$0xff] }
  0x43   :  { %519 = vmatprep.subr.mxu1 %v470_v61  ;;  %v495_v56 = vld [vmem:[#allocation7 + $0x180] sm:$0xff]  ;;  %v492_v61 = vld [vmem:[#allocation7 + $0x168] sm:$0xff] }
  0x44   :  { %520 = vmatpush1.msra.mxu1 %v469_v62  ;;  %v491_v62 = vld [vmem:[#allocation7 + $0x160] sm:$0xff] }
  0x45   :  { %521 = vmatprep.subr.mxu1 %v468_v63  ;;  %v490_v63 = vld [vmem:[#allocation7 + $0x158] sm:$0xff] }
  0xf8   :  { %v159_v10 = vpop.f32.mrf.mxu0 }
  0xf9   :  { %v160_v11 = vadd.f32 %v159_v10, %v78_v9  ;;  %v458_v9 = vld [vmem:[#allocation7 + $0x58] sm:$0xff]  ;;  %v457_v10 = vld [vmem:[#allocation7 + $0x50] sm:$0xff] }
  0xfa   :  { %v614_v12 = vpop.f32.mrf.mxu0 }
  0xfb   :  { %v163_v13 = vmax.f32 %v160_v11, 0.0  ;;  %v456_v11 = vld [vmem:[#allocation7 + $0x48] sm:$0xff]  ;;  %v455_v12 = vld [vmem:[#allocation7 + $0x40] sm:$0xff] }
  0xfd   :  { %624 = vmatmul.mubr.msk.f32.vlgmr.msra.gmra.mxu0 %vm168_vm3, %v163_v13  ;;  %v454_v13 = vld [vmem:[#allocation7 + $0x38] sm:$0xff] }
  0xfe   :  { %290 = vmatpush1.msra.mxu0 %v249_v14  ;;  %329 = vmatprep.mubr.f32.mxu0 %v744_v0  ;;  %v467_v0 = vld [vmem:[#allocation7 + $0xa0] sm:$0xff]  ;;  %v453_v14 = vld [vmem:[#allocation7 + $0x30] sm:$0xff] }
  0xff   :  { %291 = vmatprep.subr.mxu0 %v248_v15  ;;  %522 = vmatpush1.msra.mxu1 %v467_v0  ;;  %v452_v15 = vld [vmem:[#allocation7 + $0x28] sm:$0xff]  ;;  %v489_v0 = vld [vmem:[#allocation7 + $0x150] sm:$0xff] }
 0x100   :  { %292 = vmatpush1.msra.mxu0 %v247_v16  ;;  %523 = vmatprep.subr.mxu1 %v466_v1  ;;  %v451_v16 = vld [vmem:[#allocation7 + $0x20] sm:$0xff]  ;;  %v486_v1 = vld [vmem:[#allocation7 + $0x138] sm:$0xff] }
 0x101   :  { %293 = vmatprep.subr.mxu0 %v246_v17  ;;  %524 = vmatpush1.msra.mxu1 %v465_v2  ;;  %v450_v17 = vld [vmem:[#allocation7 + $0x18] sm:$0xff]  ;;  %v485_v2 = vld [vmem:[#allocation7 + $0x130] sm:$0xff] }
 0x102   :  { %294 = vmatpush1.msra.mxu0 %v245_v18  ;;  %525 = vmatprep.subr.mxu1 %v464_v3  ;;  %v449_v18 = vld [vmem:[#allocation7 + $0x10] sm:$0xff]  ;;  %v484_v3 = vld [vmem:[#allocation7 + $0x128] sm:$0xff] }
 0x103   :  { %295 = vmatprep.subr.mxu0 %v244_v19  ;;  %526 = vmatpush1.msra.mxu1 %v463_v4  ;;  %v448_v19 = vld [vmem:[#allocation7 + $0x8] sm:$0xff]  ;;  %v483_v4 = vld [vmem:[#allocation7 + $0x120] sm:$0xff] }
 0x104   :  { %296 = vmatpush1.msra.mxu0 %v243_v20  ;;  %527 = vmatprep.subr.mxu1 %v462_v5  ;;  %v447_v20 = vld [vmem:[#allocation7] sm:$0xff]  ;;  %v482_v5 = vld [vmem:[#allocation7 + $0x118] sm:$0xff] }
 0x105   :  { %528 = vmatpush1.msra.mxu1 %v461_v6  ;;  %v481_v6 = vld [vmem:[#allocation7 + $0x110] sm:$0xff] }
 0x106   :  { %529 = vmatprep.subr.mxu1 %v460_v7  ;;  %v480_v7 = vld [vmem:[#allocation7 + $0x108] sm:$0xff] }
 0x107   :  { %530 = vmatpush1.msra.mxu1 %v459_v8  ;;  %v479_v8 = vld [vmem:[#allocation7 + $0x100] sm:$0xff] }
 0x108   :  { %531 = vmatprep.subr.mxu1 %v458_v9  ;;  %v407_v9 = vand.u32 4, %v821_v37 }
 0x109   :  { %532 = vmatpush1.msra.mxu1 %v457_v10  ;;  %v408_v10 = vand.u32 4, %v824_v38 }
 0x10a   :  { %533 = vmatprep.subr.mxu1 %v456_v11  ;;  %vm409_vm14 = vcmp.ne.s32.totalorder %v407_v9, 0 }
 0x10b   :  { %534 = vmatpush1.msra.mxu1 %v455_v12  ;;  %vm410_vm15 = vcmp.ne.s32.totalorder %v408_v10, 0 }
 0x10c   :  { %535 = vmatprep.subr.mxu1 %v454_v13 }
 0x10d   :  { %536 = vmatpush1.msra.mxu1 %v453_v14 }
 0x10e   :  { %537 = vmatprep.subr.mxu1 %v452_v15 }
 0x10f   :  { %538 = vmatpush1.msra.mxu1 %v451_v16 }
 0x110   :  { %539 = vmatprep.subr.mxu1 %v450_v17 }
 0x111   :  { %540 = vmatpush1.msra.mxu1 %v449_v18 }
 0x112   :  { %541 = vmatprep.subr.mxu1 %v448_v19 }
 0x113   :  { %542 = vmatpush1.msra.mxu1 %v447_v20 }
 0x1bd   :  { %v238_v22 = vpop.f32.mrf.mxu0 }
 0x1be   :  { %v239_v23 = vadd.f32 %v238_v22, %v79_v21  ;;  %v510_v21 = vld [vmem:[#allocation7 + $0x1f8] sm:$0xff]  ;;  %v509_v22 = vld [vmem:[#allocation7 + $0x1f0] sm:$0xff] }
 0x1bf   :  { %v625_v24 = vpop.f32.mrf.mxu0  ;;  %543 = vmatprep.subr.mxu1 %v510_v21 }
 0x1c0   :  { %v242_v25 = vmax.f32 %v239_v23, 0.0  ;;  %v508_v23 = vld [vmem:[#allocation7 + $0x1e8] sm:$0xff]  ;;  %v507_v24 = vld [vmem:[#allocation7 + $0x1e0] sm:$0xff]  ;;  %544 = vmatpush2.msra.mxu1 %v509_v22 }
 0x1c1   :  { %545 = vmatprep.subr.mxu1 %v508_v23 }
 0x1c2   :  { %599 = vmatmul.mubr.msk.f32.vlgmr.msra.gmra.mxu0 %vm168_vm3, %v242_v25  ;;  %v506_v25 = vld [vmem:[#allocation7 + $0x1d8] sm:$0xff]  ;;  %546 = vmatpush2.msra.mxu1 %v507_v24 }
 0x1c3   :  { %547 = vmatprep.subr.mxu1 %v506_v25 }
 0x1c4   :  { %548 = vmatpush2.msra.mxu1 %v505_v26 }
 0x1c5   :  { %549 = vmatprep.subr.mxu1 %v504_v27 }
 0x1c6   :  { %550 = vmatpush2.msra.mxu1 %v503_v28 }
 0x1c7   :  { %551 = vmatprep.subr.mxu1 %v502_v29 }
 0x282   :  { %v331_v33 = vpop.f32.mrf.mxu0 }
 0x283   :  { %v813_v34 = vadd.f32 %v331_v33, %v255_v31  ;;  %v374_v31 = vand.u32 2, %v824_v38 }
 0x284   :  { %v333_v35 = vpop.f32.mrf.mxu0 }
 0x285   :  { %v815_v36 = vadd.f32 %v333_v35, %v259_v32  ;;  %355 = vrot.lane.b32.xlu1 %v813_v34, %s746_s24  ;;  %v501_v35 = vld [vmem:[#allocation7 + $0x1b0] sm:$0xff]  ;;  %vm844_vm11 = vcmp.ne.s32.totalorder %v374_v31, 0 }
 0x286   :  { %552 = vmatpush2.msra.mxu1 %v501_v35 }
 0x287   :  { %344 = vrot.lane.b32.xlu0 %v815_v36, %s747_s25 }
 0x289   :  { %357 = vrot.lane.b32.xlu1 %v815_v36, %s746_s24 }
 0x28b   :  { %348 = vrot.lane.b32.xlu0 %v813_v34, %s747_s25 }
 0x2f7   :  { %v356_v39 = vpop.permute.xlu1 %355 }
 0x2f9   :  { %v345_v42 = vpop.permute.xlu0 %344 }
 0x2fb   :  { %v358_v43 = vpop.permute.xlu1 %357 }
 0x2fc   :  { %v360_v45 = vsel %vm359_vm4, %v356_v39, %v358_v43  ;;  %v364_v46 = vsel %vm359_vm4, %v358_v43, %v356_v39  ;;  %v500_v39 = vld [vmem:[#allocation7 + $0x1a8] sm:$0xff]  ;;  %v498_v43 = vld [vmem:[#allocation7 + $0x198] sm:$0xff] }
 0x2fd   :  { %v349_v44 = vpop.permute.xlu0 %348  ;;  %553 = vmatprep.subr.mxu1 %v500_v39 }
 0x2fe   :  { %v351_v47 = vsel %vm350_vm5, %v349_v44, %v345_v42  ;;  %v354_v48 = vsel %vm350_vm5, %v345_v42, %v349_v44  ;;  %554 = vmatpush2.msra.mxu1 %v499_v40 }
 0x2ff   :  { %v369_v49 = vsel %vm341_vm6, %v354_v48, %v360_v45  ;;  %v370_v50 = vsel %vm342_vm7, %v351_v47, %v364_v46  ;;  %555 = vmatprep.subr.mxu1 %v498_v43  ;;  %v497_v46 = vld [vmem:[#allocation7 + $0x190] sm:$0xff] }
 0x300   :  { %v829_v51 = vmax.f32 %v813_v34, %v369_v49  ;;  %v832_v52 = vmax.f32 %v815_v36, %v370_v50  ;;  %556 = vmatpush2.msra.mxu1 %v497_v46 }
 0x301   :  { %557 = vmatprep.subr.mxu1 %v496_v53 }
 0x302   :  { %382 = vrot.lane.b32.xlu1 %v829_v51, %s748_s4  ;;  %378 = vrot.lane.b32.xlu0 %v832_v52, %s748_s4 }
 0x303   :  { %558 = vmatpush2.msra.mxu1 %v495_v56 }
 0x304   :  { %559 = vmatprep.subr.mxu1 %v494_v59 }
 0x305   :  { %560 = vmatpush2.msra.mxu1 %v493_v60 }
 0x306   :  { %391 = vrot.lane.b32.xlu1 %v832_v52, %s749_s26  ;;  %389 = vrot.lane.b32.xlu0 %v829_v51, %s749_s26 }
 0x307   :  { %561 = vmatprep.subr.mxu1 %v492_v61 }
 0x308   :  { %562 = vmatpush2.msra.mxu1 %v491_v62 }
 0x309   :  { %563 = vmatprep.subr.mxu1 %v490_v63 }
 0x30a   :  { %564 = vmatpush2.msra.mxu1 %v489_v0 }
 0x374   :  { %v383_v32 = vpop.permute.xlu1 %382  ;;  %v379_v33 = vpop.permute.xlu0 %378 }
 0x375   :  { %v385_v47 = vsel %vm384_vm8, %v383_v32, %v379_v33  ;;  %v388_v48 = vsel %vm384_vm8, %v379_v33, %v383_v32 }
 0x378   :  { %v392_v44 = vpop.permute.xlu1 %391  ;;  %v390_v45 = vpop.permute.xlu0 %389 }
 0x379   :  { %v394_v49 = vsel %vm393_vm9, %v390_v45, %v392_v44  ;;  %v398_v50 = vsel %vm393_vm9, %v392_v44, %v390_v45 }
 0x37a   :  { %v403_v54 = vsel %vm840_vm10, %v388_v48, %v394_v49  ;;  %v404_v55 = vsel %vm844_vm11, %v385_v47, %v398_v50 }
 0x37b   :  { %v406_v57 = vmax.f32 %v832_v52, %v404_v55  ;;  %v405_v58 = vmax.f32 %v829_v51, %v403_v54  ;;  %v488_v52 = vld [vmem:[#allocation7 + $0x148] sm:$0xff]  ;;  %v487_v51 = vld [vmem:[#allocation7 + $0x140] sm:$0xff] }
 0x37c   :  { %565 = vmatprep.subr.mxu1 %v488_v52 }
 0x37d   :  { %412 = vrot.lane.b32.xlu0 %v406_v57, %s750_s27  ;;  %416 = vrot.lane.b32.xlu1 %v405_v58, %s750_s27 }
 0x37e   :  { %566 = vmatpush2.msra.mxu1 %v487_v51 }
 0x37f   :  { %567 = vmatprep.subr.mxu1 %v486_v1 }
 0x380   :  { %568 = vmatpush2.msra.mxu1 %v485_v2 }
 0x381   :  { %423 = vrot.lane.b32.xlu0 %v405_v58, %s751_s28  ;;  %425 = vrot.lane.b32.xlu1 %v406_v57, %s751_s28 }
 0x382   :  { %569 = vmatprep.subr.mxu1 %v484_v3 }
 0x383   :  { %570 = vmatpush2.msra.mxu1 %v483_v4 }
 0x384   :  { %571 = vmatprep.subr.mxu1 %v482_v5 }
 0x385   :  { %572 = vmatpush2.msra.mxu1 %v481_v6 }
 0x386   :  { %573 = vmatprep.subr.mxu1 %v480_v7 }
 0x387   :  { %574 = vmatpush2.msra.mxu1 %v479_v8 }
 0x3ef   :  { %v413_v11 = vpop.permute.xlu0 %412  ;;  %v417_v12 = vpop.permute.xlu1 %416 }
 0x3f0   :  { %v419_v15 = vsel %vm418_vm12, %v417_v12, %v413_v11  ;;  %v422_v16 = vsel %vm418_vm12, %v413_v11, %v417_v12 }
 0x3f3   :  { %v424_v13 = vpop.permute.xlu0 %423  ;;  %v426_v14 = vpop.permute.xlu1 %425 }
 0x3f4   :  { %v428_v17 = vsel %vm427_vm13, %v424_v13, %v426_v14  ;;  %v432_v18 = vsel %vm427_vm13, %v426_v14, %v424_v13 }
 0x3f5   :  { %v437_v19 = vsel %vm409_vm14, %v422_v16, %v428_v17  ;;  %v438_v20 = vsel %vm410_vm15, %v419_v15, %v432_v18 }
 0x3f6   :  { %v439_v21 = vmax.f32 %v405_v58, %v437_v19  ;;  %v440_v22 = vmax.f32 %v406_v57, %v438_v20 }
 0x3f8   :  { %v441_v37 = vsub.f32 %v813_v34, %v439_v21  ;;  %v442_v38 = vsub.f32 %v815_v36, %v440_v22 }
 0x3fa   :  { %v443_v23 = vmul.f32 1.442695, %v441_v37  ;;  %v445_v24 = vmul.f32 1.442695, %v442_v38 }
 0x3fc   :  { %642 = vpow2.f32 %v443_v23 }
 0x3fd   :  { %644 = vpow2.f32 %v445_v24 }
 0x409   :  { %v643_v25 = vpop.eup %642 }
 0x40a   :  { %v645_v26 = vpop.eup %644 }
 0x40b   :  { %575 = vmatprep.mubr.f32.mxu1 %v645_v26 }
 0x40c   :  { %576 = vmatmul.mubr.f32.vlgmr.msra.gmra.mxu1 %v643_v25 }
 0x4cc   :  { %v577_v27 = vpop.f32.mrf.mxu1 }
 0x4cd   :  { %646 = vrcp.f32 %v577_v27 }
 0x4ce   :  { %v579_v28 = vpop.f32.mrf.mxu1 }
 0x4cf   :  { %648 = vrcp.f32 %v579_v28 }
 0x4da   :  { %v647_v29 = vpop.eup %646 }
 0x4db   :  { %v583_v30 = vmul.f32 %v647_v29, %v643_v25 }
 0x4dc   :  { %v649_v31 = vpop.eup %648 }
 0x4dd   :  { %586 = vst [vmem:[%s870_s6] sm:$0xff] %v583_v30  ;;  %v585_v34 = vmul.f32 %v649_v31, %v645_v26 }
 0x4df   :  { %587 = vst [vmem:[%s870_s6 + $0x8] sm:$0xff] %v585_v34 }
 0x4e0   :  { %592 = vsyncpa [#allocation3], 1 }
 0x4e1   :  { %593 = vsyncpa [#allocation5], 1 }
 0x4e2   :  { %594 = vsyncpa [#allocation8], 1 }

</bundles_post_ra>
